<compile_context>
chip_gen: v6e
topology: v6e:2x2x1
jax: 0.10.0
libtpu: 0.0.40
codegen_flags: <defaults>
</compile_context>

<pallas_src>
import functools

import jax
import jax.numpy as jnp
from jax.experimental import pallas as pl
from jax.experimental.pallas import tpu as pltpu


def _round_up(v, m):
    return ((v + m - 1) // m) * m


# ---------------------------------------------------------------------------
# Kernels.  Grid is (M//tm, N//tn, K//tk); K is the reduction ("arbitrary")
# axis, M/N are "parallel" (sharded across TensorCores on v7x).
# The per-row 1/(||x||+eps) is precomputed outside and arrives as inv_ref.
# ---------------------------------------------------------------------------

def layer_kernel_acc(x_ref, w_ref, inv_ref, b_ref, o_ref, acc_ref):
    """Variant for narrow output dtypes: f32 VMEM accumulator scratch.

    x_ref  : (tm, tk) activations (compute dtype, cast in the wrapper)
    w_ref  : (tk, tn) weight slab (compute dtype)
    inv_ref: (tm, 1)  f32 per-row 1/(||x||_2 + 1e-4)
    b_ref  : (1,  tn) f32 bias slab
    o_ref  : (tm, tn) output tile (revisited across K)
    acc_ref: (tm, tn) f32 matmul accumulator (VMEM scratch)
    """
    k = pl.program_id(2)

    @pl.when(k == 0)
    def _():
        acc_ref[...] = jnp.zeros_like(acc_ref)

    acc_ref[...] += jnp.dot(
        x_ref[...], w_ref[...], preferred_element_type=jnp.float32)

    @pl.when(k == pl.num_programs(2) - 1)
    def _():
        y = acc_ref[...] * inv_ref[...] + b_ref[...]
        o_ref[...] = y.astype(o_ref.dtype)


def layer_kernel_f32out(x_ref, w_ref, inv_ref, b_ref, o_ref):
    """Variant for f32 outputs: accumulate directly into the resident output
    tile (no acc scratch, no epilogue copy)."""
    k = pl.program_id(2)

    @pl.when(k == 0)
    def _():
        o_ref[...] = jnp.zeros_like(o_ref)

    o_ref[...] += jnp.dot(
        x_ref[...], w_ref[...], preferred_element_type=jnp.float32)

    @pl.when(k == pl.num_programs(2) - 1)
    def _():
        o_ref[...] = o_ref[...] * inv_ref[...] + b_ref[...]


@functools.partial(
    jax.jit,
    static_argnames=("compute_dtype", "out_dtype", "tm", "tn", "tk"))
def layer_forward(x, weight_t, bias, *, compute_dtype=jnp.bfloat16,
                  out_dtype=None, tm=None, tn=None, tk=None):
    """x: [B, in_dim], weight_t: [in_dim, out_dim], bias: [1, out_dim]."""
    B, in_dim = x.shape
    out_dim = weight_t.shape[1]
    out_dtype = jnp.dtype(out_dtype) if out_dtype is not None else x.dtype

    # Tile sizes: sublane-aligned M; N/K lane-dense and rounded to multiples of
    # 256 (full 2x256x256 MXU slabs on v6e/v7x; also fine on v5e).  Caps of
    # 512/1024/512 keep the double-buffered working set ~10 MiB, inside the
    # 32 MiB scoped-VMEM limit set below on every generation (v5e/v6e/v7x).
    tm = tm or min(512, _round_up(B, 8))
    tn = tn or min(1024, _round_up(out_dim, 256))
    tk = tk or min(512, _round_up(in_dim, 256))

    Mp = _round_up(B, tm)
    Np = _round_up(out_dim, tn)
    Kp = _round_up(in_dim, tk)

    # v7x has 2 TensorCores: if the parallel (i, j) grid collapses to a single
    # tile, split N so both cores get (real) work.
    if (Mp // tm) * (Np // tn) == 1 and tn >= 256 and out_dim > tn // 2:
        tn //= 2  # Np stays a multiple of tn

    # Row-wise 1/(||x||_2 + eps): tiny mem-bound prologue in f32 (exact),
    # computed once instead of once per N tile inside the kernel.
    ssq = jnp.sum(x.astype(jnp.float32) ** 2, axis=1, keepdims=True)
    inv = 1.0 / (jnp.sqrt(ssq) + 1e-4)

    # Zero padding is neutral for the matmul; padded rows get inv = 0 so their
    # (sliced-off) outputs stay finite.
    x_p = x.astype(compute_dtype)
    if (Mp, Kp) != (B, in_dim):
        x_p = jnp.pad(x_p, ((0, Mp - B), (0, Kp - in_dim)))
    inv_p = inv if Mp == B else jnp.pad(inv, ((0, Mp - B), (0, 0)))
    w_p = weight_t.astype(compute_dtype)
    if (Kp, Np) != (in_dim, out_dim):
        w_p = jnp.pad(w_p, ((0, Kp - in_dim), (0, Np - out_dim)))
    b_p = bias.astype(jnp.float32)
    if Np != out_dim:
        b_p = jnp.pad(b_p, ((0, 0), (0, Np - out_dim)))

    grid = (Mp // tm, Np // tn, Kp // tk)

    use_f32_out = out_dtype == jnp.float32
    kernel = layer_kernel_f32out if use_f32_out else layer_kernel_acc
    scratch = [] if use_f32_out else [pltpu.VMEM((tm, tn), jnp.float32)]

    bytes_in = (Mp * Kp * x_p.dtype.itemsize
                + Kp * Np * w_p.dtype.itemsize
                + Mp * 4 + Np * 4)
    bytes_out = Mp * Np * jnp.dtype(out_dtype).itemsize

    out = pl.pallas_call(
        kernel,
        out_shape=jax.ShapeDtypeStruct((Mp, Np), out_dtype),
        grid_spec=pltpu.PrefetchScalarGridSpec(
            num_scalar_prefetch=0,
            grid=grid,
            in_specs=[
                pl.BlockSpec((tm, tk), lambda i, j, k: (i, k)),   # x
                pl.BlockSpec((tk, tn), lambda i, j, k: (k, j)),   # weight
                pl.BlockSpec((tm, 1), lambda i, j, k: (i, 0)),    # 1/norm
                pl.BlockSpec((1, tn), lambda i, j, k: (0, j)),    # bias
            ],
            out_specs=pl.BlockSpec((tm, tn), lambda i, j, k: (i, j)),
            scratch_shapes=scratch,
        ),
        compiler_params=pltpu.CompilerParams(
            dimension_semantics=("parallel", "parallel", "arbitrary"),
            vmem_limit_bytes=32 << 20),
        cost_estimate=pl.CostEstimate(
            flops=2 * Mp * Np * Kp,
            transcendentals=0,
            bytes_accessed=bytes_in + bytes_out),
    )(x_p, w_p, inv_p, b_p)

    return out[:B, :out_dim]


def reference_forward(x, weight_t, bias):
    # Pure-JAX f32 reference mirroring the PyTorch forward.
    norm = jnp.sqrt(jnp.sum(x * x, axis=1, keepdims=True))
    x_dir = x / (norm + 1e-4)
    return x_dir @ weight_t + bias


if __name__ == "__main__":
    key = jax.random.PRNGKey(0)
    k_x, k_w, k_b = jax.random.split(key, 3)

    B, in_dim, out_dim = 8, 32, 32

    x = jax.random.normal(k_x, (B, in_dim), dtype=jnp.float32)
    # Deterministic parameter init (roughly kaiming-uniform scale like nn.Linear).
    bound = 1.0 / (in_dim ** 0.5)
    weight_t = jax.random.uniform(k_w, (in_dim, out_dim),
                                  minval=-bound, maxval=bound, dtype=jnp.float32)
    bias = jax.random.uniform(k_b, (1, out_dim),
                              minval=-bound, maxval=bound, dtype=jnp.float32)

    ref = reference_forward(x, weight_t, bias)

    # Full-precision path (f32 operands, f32 output, no acc scratch): tight tol.
    out_f32 = jax.block_until_ready(
        layer_forward(x, weight_t, bias, compute_dtype=jnp.float32))
    assert out_f32.shape == (B, out_dim)
    assert jnp.allclose(out_f32, ref, atol=1e-4, rtol=1e-4), "f32 path mismatch"

    # bf16 MXU operands with f32 accumulation, f32 output: looser tolerance.
    out_bf16 = jax.block_until_ready(
        layer_forward(x, weight_t, bias, compute_dtype=jnp.bfloat16))
    assert out_bf16.shape == (B, out_dim)
    assert jnp.allclose(out_bf16, ref, atol=5e-2, rtol=5e-2), "bf16 path mismatch"

    # bf16 operands AND bf16 output (exercises the accumulator-scratch variant
    # and the halved output-writeback path).
    out_bf16o = jax.block_until_ready(
        layer_forward(x, weight_t, bias,
                      compute_dtype=jnp.bfloat16, out_dtype=jnp.bfloat16))
    assert out_bf16o.shape == (B, out_dim) and out_bf16o.dtype == jnp.bfloat16
    assert jnp.allclose(out_bf16o.astype(jnp.float32), ref,
                        atol=7e-2, rtol=7e-2), "bf16-out path mismatch"

    print("KERNEL_OK")
</pallas_src>

<mosaic_0001>
module attributes {stable_mosaic.version = 11 : i64} {
  func.func @layer_kernel_f32out(%arg0: i32, %arg1: i32, %arg2: i32, %arg3: memref<8x256xf32, #tpu.memory_space<vmem>>, %arg4: memref<256x256xf32, #tpu.memory_space<vmem>>, %arg5: memref<8x1xf32, #tpu.memory_space<vmem>>, %arg6: memref<1x256xf32, #tpu.memory_space<vmem>>, %arg7: memref<8x256xf32, #tpu.memory_space<vmem>>) attributes {dimension_semantics = [#tpu.dimension_semantics<parallel>, #tpu.dimension_semantics<parallel>, #tpu.dimension_semantics<arbitrary>], iteration_bounds = array<i64: 1, 1, 1>, scalar_prefetch = 0 : i64, scratch_operands = 0 : i64, tpu.core_type = #tpu.core_type<tc>, window_params = [{transform_indices = @transform_0, window_bounds = array<i64: 8, 256>}, {transform_indices = @transform_1, window_bounds = array<i64: 256, 256>}, {transform_indices = @transform_2, window_bounds = array<i64: 8, 1>}, {transform_indices = @transform_3, window_bounds = array<i64: 1, 256>}, {transform_indices = @transform_4, window_bounds = array<i64: 8, 256>}]} {
    %c0_i32 = arith.constant 0 : i32
    %0 = arith.cmpi eq, %arg2, %c0_i32 : i32
    %1 = arith.extui %0 : i1 to i32
    %c0_i32_0 = arith.constant 0 : i32
    %2 = arith.cmpi ne, %1, %c0_i32_0 : i32
    scf.if %2 {
      %cst_10 = arith.constant 0.000000e+00 : f32
      %12 = vector.broadcast %cst_10 : f32 to vector<8x256xf32>
      %c0_11 = arith.constant 0 : index
      %c0_12 = arith.constant 0 : index
      %13 = vector.load %arg7[%c0_11, %c0_12] : memref<8x256xf32, #tpu.memory_space<vmem>>, vector<8x256xf32>
      tpu.vector_store %arg7[%c0_11, %c0_12], %12 {strides = array<i32>} : memref<8x256xf32, #tpu.memory_space<vmem>>, vector<8x256xf32>,
    } else {
    }
    %c0 = arith.constant 0 : index
    %c0_1 = arith.constant 0 : index
    %3 = vector.load %arg7[%c0, %c0_1] : memref<8x256xf32, #tpu.memory_space<vmem>>, vector<8x256xf32>
    %c0_2 = arith.constant 0 : index
    %c0_3 = arith.constant 0 : index
    %4 = vector.load %arg3[%c0_2, %c0_3] : memref<8x256xf32, #tpu.memory_space<vmem>>, vector<8x256xf32>
    %c0_4 = arith.constant 0 : index
    %c0_5 = arith.constant 0 : index
    %5 = vector.load %arg4[%c0_4, %c0_5] : memref<256x256xf32, #tpu.memory_space<vmem>>, vector<256x256xf32>
    %cst = arith.constant dense<0.000000e+00> : vector<8x256xf32>
    %6 = tpu.matmul %4, %5, %cst {dimension_numbers = #tpu.dot_dimension_numbers<[1], [0], [0], [1], [0, 0, 1, 1], [], []>} : vector<8x256xf32>, vector<256x256xf32>, vector<8x256xf32> -> vector<8x256xf32>
    %7 = arith.addf %3, %6 : vector<8x256xf32>
    %c0_6 = arith.constant 0 : index
    %c0_7 = arith.constant 0 : index
    %8 = vector.load %arg7[%c0_6, %c0_7] : memref<8x256xf32, #tpu.memory_space<vmem>>, vector<8x256xf32>
    tpu.vector_store %arg7[%c0_6, %c0_7], %7 {strides = array<i32>} : memref<8x256xf32, #tpu.memory_space<vmem>>, vector<8x256xf32>,
    %c0_i32_8 = arith.constant 0 : i32
    %9 = arith.cmpi eq, %arg2, %c0_i32_8 : i32
    %10 = arith.extui %9 : i1 to i32
    %c0_i32_9 = arith.constant 0 : i32
    %11 = arith.cmpi ne, %10, %c0_i32_9 : i32
    scf.if %11 {
      %c0_10 = arith.constant 0 : index
      %c0_11 = arith.constant 0 : index
      %12 = vector.load %arg7[%c0_10, %c0_11] : memref<8x256xf32, #tpu.memory_space<vmem>>, vector<8x256xf32>
      %c0_12 = arith.constant 0 : index
      %c0_13 = arith.constant 0 : index
      %13 = vector.load %arg5[%c0_12, %c0_13] : memref<8x1xf32, #tpu.memory_space<vmem>>, vector<8x1xf32>
      %14 = vector.broadcast %13 : vector<8x1xf32> to vector<8x256xf32>
      %15 = arith.mulf %12, %14 : vector<8x256xf32>
      %c0_14 = arith.constant 0 : index
      %c0_15 = arith.constant 0 : index
      %16 = vector.load %arg6[%c0_14, %c0_15] : memref<1x256xf32, #tpu.memory_space<vmem>>, vector<1x256xf32>
      %17 = vector.broadcast %16 : vector<1x256xf32> to vector<8x256xf32>
      %18 = arith.addf %15, %17 : vector<8x256xf32>
      %c0_16 = arith.constant 0 : index
      %c0_17 = arith.constant 0 : index
      %19 = vector.load %arg7[%c0_16, %c0_17] : memref<8x256xf32, #tpu.memory_space<vmem>>, vector<8x256xf32>
      tpu.vector_store %arg7[%c0_16, %c0_17], %18 {strides = array<i32>} : memref<8x256xf32, #tpu.memory_space<vmem>>, vector<8x256xf32>,
    } else {
    }
    return
  }
  func.func @transform_0(%arg0: i32, %arg1: i32, %arg2: i32) -> (i32, i32) {
    %c0_i32 = arith.constant 0 : i32
    return %arg0, %arg2 : i32, i32
  }
  func.func @transform_1(%arg0: i32, %arg1: i32, %arg2: i32) -> (i32, i32) {
    %c0_i32 = arith.constant 0 : i32
    return %arg2, %arg1 : i32, i32
  }
  func.func @transform_2(%arg0: i32, %arg1: i32, %arg2: i32) -> (i32, i32) {
    %c0_i32 = arith.constant 0 : i32
    %c0_i32_0 = arith.constant 0 : i32
    return %arg0, %c0_i32 : i32, i32
  }
  func.func @transform_3(%arg0: i32, %arg1: i32, %arg2: i32) -> (i32, i32) {
    %c0_i32 = arith.constant 0 : i32
    %c0_i32_0 = arith.constant 0 : i32
    return %c0_i32, %arg1 : i32, i32
  }
  func.func @transform_4(%arg0: i32, %arg1: i32, %arg2: i32) -> (i32, i32) {
    %c0_i32 = arith.constant 0 : i32
    return %arg0, %arg1 : i32, i32
  }
}

</mosaic_0001>

<bundles_post_ra>
// kernel: layer_forward.1
= control target key start
LH: loop header
LB: loop body
LE: loop exit
PB: predicated region body
PF: predicated region fallthrough
CT: control target
= control target key end

     0   :  { %v202_v3 = vmov 0   ;;  %s438_s1 = inlined_call_operand.vmem [shape: f32[256,256], index: 1, kind: input, shape index: {}]   ;;  %s439_s0 = inlined_call_operand.vmem [shape: f32[8,256], index: 0, kind: input, shape index: {}]   ;;  %s440_s2 = inlined_call_operand.vmem [shape: f32[8,1], index: 2, kind: input, shape index: {}]   ;;  %s441_s3 = inlined_call_operand.vmem [shape: f32[1,256], index: 3, kind: input, shape index: {}]   ;;  %s442_s4 = inlined_call_operand.vmem [shape: f32[8,256], index: 4, kind: output, shape index: {}]  }
   0x1   :  { %v58_v0 = vld [vmem:[%s438_s1 + $0xf8] sm:$0xff]  ;;  %v57_v1 = vld [vmem:[%s438_s1 + $0xf0] sm:$0xff]  ;;  %v56_v2 = vld [vmem:[%s438_s1 + $0xe8] sm:$0xff]  ;;  %201 = vset.pattern.permute.xlu0 %v202_v3 }
   0x2   :  { %91 = vmatprep.subr.mxu0 %v58_v0  ;;  %v55_v4 = vld [vmem:[%s438_s1 + $0xe0] sm:$0xff]  ;;  %v54_v5 = vld [vmem:[%s438_s1 + $0xd8] sm:$0xff]  ;;  %v53_v6 = vld [vmem:[%s438_s1 + $0xd0] sm:$0xff] }
   0x3   :  { %92 = vmatpush1.msra.mxu0 %v57_v1  ;;  %v52_v7 = vld [vmem:[%s438_s1 + $0xc8] sm:$0xff]  ;;  %v51_v8 = vld [vmem:[%s438_s1 + $0xc0] sm:$0xff]  ;;  %v50_v9 = vld [vmem:[%s438_s1 + $0xb8] sm:$0xff] }
   0x4   :  { %93 = vmatprep.subr.mxu0 %v56_v2  ;;  %v49_v10 = vld [vmem:[%s438_s1 + $0xb0] sm:$0xff]  ;;  %v48_v11 = vld [vmem:[%s438_s1 + $0xa8] sm:$0xff]  ;;  %v47_v12 = vld [vmem:[%s438_s1 + $0xa0] sm:$0xff] }
   0x5   :  { %94 = vmatpush1.msra.mxu0 %v55_v4  ;;  %v46_v13 = vld [vmem:[%s438_s1 + $0x98] sm:$0xff]  ;;  %v45_v14 = vld [vmem:[%s438_s1 + $0x90] sm:$0xff]  ;;  %v44_v15 = vld [vmem:[%s438_s1 + $0x88] sm:$0xff]  ;;  %v181_v4 = vlaneseq }
   0x6   :  { %95 = vmatprep.subr.mxu0 %v54_v5  ;;  %v43_v16 = vld [vmem:[%s438_s1 + $0x80] sm:$0xff]  ;;  %v42_v17 = vld [vmem:[%s438_s1 + $0x78] sm:$0xff]  ;;  %v41_v18 = vld [vmem:[%s438_s1 + $0x70] sm:$0xff] }
   0x7   :  { %96 = vmatpush1.msra.mxu0 %v53_v6  ;;  %v40_v19 = vld [vmem:[%s438_s1 + $0x68] sm:$0xff]  ;;  %v39_v20 = vld [vmem:[%s438_s1 + $0x60] sm:$0xff]  ;;  %v38_v21 = vld [vmem:[%s438_s1 + $0x58] sm:$0xff]  ;;  %v182_v5 = vshrl.u32 %v181_v4, 7 }
   0x8   :  { %97 = vmatprep.subr.mxu0 %v52_v7  ;;  %v37_v22 = vld [vmem:[%s438_s1 + $0x50] sm:$0xff]  ;;  %v36_v23 = vld [vmem:[%s438_s1 + $0x48] sm:$0xff]  ;;  %v35_v24 = vld [vmem:[%s438_s1 + $0x40] sm:$0xff] }
   0x9   :  { %98 = vmatpush1.msra.mxu0 %v51_v8  ;;  %v26_v25 = vld [vmem:[%s439_s0 + $0x8] sm:$0xff]  ;;  %v34_v26 = vld [vmem:[%s438_s1 + $0x38] sm:$0xff]  ;;  %v171_v27 = vld [vmem:[%s440_s2] sm:$0xff]  ;;  %v183_v6 = vsub.s32 0, %v182_v5  ;;  %v187_v8 = vsub.s32 1, %v182_v5 }
   0xa   :  { %99 = vmatprep.subr.mxu0 %v50_v9  ;;  %155 = vmatprep.mubr.f32.mxu0 %v26_v25  ;;  %v33_v28 = vld [vmem:[%s438_s1 + $0x30] sm:$0xff]  ;;  %v32_v29 = vld [vmem:[%s438_s1 + $0x28] sm:$0xff]  ;;  %v31_v30 = vld [vmem:[%s438_s1 + $0x20] sm:$0xff] }
   0xb   :  { %100 = vmatpush1.msra.mxu0 %v49_v10  ;;  %174 = vperm.xlu0 %201, %v171_v27   ;;  %v30_v31 = vld [vmem:[%s438_s1 + $0x18] sm:$0xff]  ;;  %v29_v32 = vld [vmem:[%s438_s1 + $0x10] sm:$0xff]  ;;  %v28_v33 = vld [vmem:[%s438_s1 + $0x8] sm:$0xff] }
   0xc   :  { %101 = vmatprep.subr.mxu0 %v48_v11  ;;  %v27_v34 = vld [vmem:[%s438_s1] sm:$0xff]  ;;  %v90_v35 = vld [vmem:[%s438_s1 + $0x1f8] sm:$0xff]  ;;  %v89_v36 = vld [vmem:[%s438_s1 + $0x1f0] sm:$0xff] }
   0xd   :  { %102 = vmatpush1.msra.mxu0 %v47_v12  ;;  %v88_v37 = vld [vmem:[%s438_s1 + $0x1e8] sm:$0xff]  ;;  %v87_v38 = vld [vmem:[%s438_s1 + $0x1e0] sm:$0xff]  ;;  %v86_v39 = vld [vmem:[%s438_s1 + $0x1d8] sm:$0xff] }
   0xe   :  { %103 = vmatprep.subr.mxu0 %v46_v13  ;;  %v85_v40 = vld [vmem:[%s438_s1 + $0x1d0] sm:$0xff]  ;;  %v84_v41 = vld [vmem:[%s438_s1 + $0x1c8] sm:$0xff]  ;;  %v83_v42 = vld [vmem:[%s438_s1 + $0x1c0] sm:$0xff] }
   0xf   :  { %104 = vmatpush1.msra.mxu0 %v45_v14  ;;  %v82_v43 = vld [vmem:[%s438_s1 + $0x1b8] sm:$0xff]  ;;  %v81_v44 = vld [vmem:[%s438_s1 + $0x1b0] sm:$0xff]  ;;  %v80_v45 = vld [vmem:[%s438_s1 + $0x1a8] sm:$0xff] }
  0x10   :  { %105 = vmatprep.subr.mxu0 %v44_v15  ;;  %v79_v46 = vld [vmem:[%s438_s1 + $0x1a0] sm:$0xff]  ;;  %v78_v47 = vld [vmem:[%s438_s1 + $0x198] sm:$0xff]  ;;  %v77_v48 = vld [vmem:[%s438_s1 + $0x190] sm:$0xff] }
  0x11   :  { %106 = vmatpush1.msra.mxu0 %v43_v16  ;;  %v76_v49 = vld [vmem:[%s438_s1 + $0x188] sm:$0xff]  ;;  %v75_v50 = vld [vmem:[%s438_s1 + $0x180] sm:$0xff]  ;;  %v74_v51 = vld [vmem:[%s438_s1 + $0x178] sm:$0xff] }
  0x12   :  { %107 = vmatprep.subr.mxu0 %v42_v17  ;;  %v73_v52 = vld [vmem:[%s438_s1 + $0x170] sm:$0xff]  ;;  %v72_v53 = vld [vmem:[%s438_s1 + $0x168] sm:$0xff]  ;;  %v71_v54 = vld [vmem:[%s438_s1 + $0x160] sm:$0xff] }
  0x13   :  { %108 = vmatpush1.msra.mxu0 %v41_v18  ;;  %v70_v55 = vld [vmem:[%s438_s1 + $0x158] sm:$0xff]  ;;  %v69_v56 = vld [vmem:[%s438_s1 + $0x150] sm:$0xff]  ;;  %v68_v57 = vld [vmem:[%s438_s1 + $0x148] sm:$0xff] }
  0x14   :  { %109 = vmatprep.subr.mxu0 %v40_v19  ;;  %v67_v58 = vld [vmem:[%s438_s1 + $0x140] sm:$0xff]  ;;  %v66_v59 = vld [vmem:[%s438_s1 + $0x138] sm:$0xff]  ;;  %v65_v60 = vld [vmem:[%s438_s1 + $0x130] sm:$0xff] }
  0x15   :  { %110 = vmatpush1.msra.mxu0 %v39_v20  ;;  %v64_v61 = vld [vmem:[%s438_s1 + $0x128] sm:$0xff]  ;;  %v63_v62 = vld [vmem:[%s438_s1 + $0x120] sm:$0xff]  ;;  %v62_v63 = vld [vmem:[%s438_s1 + $0x118] sm:$0xff] }
  0x16   :  { %111 = vmatprep.subr.mxu0 %v38_v21  ;;  %v61_v0 = vld [vmem:[%s438_s1 + $0x110] sm:$0xff]  ;;  %v60_v1 = vld [vmem:[%s438_s1 + $0x108] sm:$0xff]  ;;  %v59_v2 = vld [vmem:[%s438_s1 + $0x100] sm:$0xff] }
  0x17   :  { %112 = vmatpush1.msra.mxu0 %v37_v22  ;;  %v25_v3 = vld [vmem:[%s439_s0] sm:$0xff] }
  0x18   :  { %113 = vmatprep.subr.mxu0 %v36_v23  ;;  %v179_v7 = vld [vmem:[%s441_s3] sm:$0x3] }
  0x19   :  { %114 = vmatpush1.msra.mxu0 %v35_v24  ;;  %v184_v11 = vrot.slane %v179_v7, %v183_v6  ;;  %v188_v13 = vrot.slane %v179_v7, %v187_v8 }
  0x1a   :  { %115 = vmatprep.subr.mxu0 %v34_v26 }
  0x1b   :  { %116 = vmatpush1.msra.mxu0 %v33_v28 }
  0x1c   :  { %117 = vmatprep.subr.mxu0 %v32_v29 }
  0x1d   :  { %118 = vmatpush1.msra.mxu0 %v31_v30 }
  0x1e   :  { %119 = vmatprep.subr.mxu0 %v30_v31 }
  0x1f   :  { %120 = vmatpush1.msra.mxu0 %v29_v32 }
  0x20   :  { %121 = vmatprep.subr.mxu0 %v28_v33 }
  0x21   :  { %122 = vmatpush1.msra.mxu0 %v27_v34 }
  0x22   :  { %123 = vmatprep.subr.mxu0 %v90_v35 }
  0x23   :  { %124 = vmatpush2.msra.mxu0 %v89_v36 }
  0x24   :  { %125 = vmatprep.subr.mxu0 %v88_v37 }
  0x25   :  { %126 = vmatpush2.msra.mxu0 %v87_v38 }
  0x26   :  { %127 = vmatprep.subr.mxu0 %v86_v39 }
  0x27   :  { %128 = vmatpush2.msra.mxu0 %v85_v40 }
  0x28   :  { %129 = vmatprep.subr.mxu0 %v84_v41 }
  0x29   :  { %130 = vmatpush2.msra.mxu0 %v83_v42 }
  0x2a   :  { %131 = vmatprep.subr.mxu0 %v82_v43 }
  0x2b   :  { %132 = vmatpush2.msra.mxu0 %v81_v44 }
  0x2c   :  { %133 = vmatprep.subr.mxu0 %v80_v45 }
  0x2d   :  { %134 = vmatpush2.msra.mxu0 %v79_v46 }
  0x2e   :  { %135 = vmatprep.subr.mxu0 %v78_v47 }
  0x2f   :  { %136 = vmatpush2.msra.mxu0 %v77_v48 }
  0x30   :  { %137 = vmatprep.subr.mxu0 %v76_v49 }
  0x31   :  { %138 = vmatpush2.msra.mxu0 %v75_v50 }
  0x32   :  { %139 = vmatprep.subr.mxu0 %v74_v51 }
  0x33   :  { %140 = vmatpush2.msra.mxu0 %v73_v52 }
  0x34   :  { %141 = vmatprep.subr.mxu0 %v72_v53 }
  0x35   :  { %142 = vmatpush2.msra.mxu0 %v71_v54 }
  0x36   :  { %143 = vmatprep.subr.mxu0 %v70_v55 }
  0x37   :  { %144 = vmatpush2.msra.mxu0 %v69_v56 }
  0x38   :  { %145 = vmatprep.subr.mxu0 %v68_v57 }
  0x39   :  { %146 = vmatpush2.msra.mxu0 %v67_v58 }
  0x3a   :  { %147 = vmatprep.subr.mxu0 %v66_v59 }
  0x3b   :  { %148 = vmatpush2.msra.mxu0 %v65_v60 }
  0x3c   :  { %149 = vmatprep.subr.mxu0 %v64_v61 }
  0x3d   :  { %150 = vmatpush2.msra.mxu0 %v63_v62 }
  0x3e   :  { %151 = vmatprep.subr.mxu0 %v62_v63 }
  0x3f   :  { %152 = vmatpush2.msra.mxu0 %v61_v0 }
  0x40   :  { %153 = vmatprep.subr.mxu0 %v60_v1 }
  0x41   :  { %154 = vmatpush2.msra.mxu0 %v59_v2 }
  0x42   :  { %156 = vmatmul.mubr.f32.vlgmr.msra.gmra.mxu0 %v25_v3 }
  0x86   :  { %v175_v10 = vpop.permute.xlu0 %174 }
 0x102   :  { %v157_v9 = vpop.f32.mrf.mxu0 }
 0x103   :  { %v177_v14 = vmul.f32 %v175_v10, %v157_v9 }
 0x104   :  { %v159_v12 = vpop.f32.mrf.mxu0 }
 0x105   :  { %v178_v15 = vmul.f32 %v175_v10, %v159_v12  ;;  %v191_v16 = vadd.f32 %v184_v11, %v177_v14 }
 0x107   :  { %v192_v17 = vadd.f32 %v188_v13, %v178_v15  ;;  %193 = vst [vmem:[%s442_s4] sm:$0xff] %v191_v16 }
 0x109   :  { %194 = vst [vmem:[%s442_s4 + $0x8] sm:$0xff] %v192_v17 }

</bundles_post_ra>
